<compile_context>
chip_gen: v5e
topology: v5e:2x2
jax: 0.10.0
libtpu: 0.0.40
codegen_flags: <defaults>
</compile_context>

<pallas_src>
import jax
import jax.numpy as jnp
from jax.experimental import pallas as pl
from jax.experimental.pallas import tpu as pltpu

_LANE = 128
_DEFAULT_BLOCK_BYTES = 4 * 1024 * 1024  # ~4 MiB per block: near HBM roofline
                                        # on v5e/v6e/v7x, well under VMEM.


def _sublanes(dtype) -> int:
    """Minimum sublane multiple for the given dtype (8 f32 / 16 bf16 / 32 i8)."""
    itemsize = jnp.dtype(dtype).itemsize
    return max(8, 32 // itemsize)


def _relu_kernel(x_ref, o_ref):
    # Elementwise hot path on the VPU; DMA in/out handled by BlockSpec pipeline.
    x = x_ref[...]
    o_ref[...] = jnp.maximum(x, jnp.zeros_like(x))


def _relu_2d(x2d, *, block_bytes=_DEFAULT_BLOCK_BYTES, donate=False):
    """ReLU over a (rows, 128) slab with roofline-sized row tiles."""
    R, C = x2d.shape
    dsize = jnp.dtype(x2d.dtype).itemsize
    sub = _sublanes(x2d.dtype)

    # Rows per block targeting ~block_bytes, rounded down to a sublane multiple.
    tr = max(sub, min(R, block_bytes // (C * dsize)))
    tr = max(sub, (tr // sub) * sub)

    # Ragged last block is fine: Pallas masks it (no padding / no asserts).
    grid = (pl.cdiv(R, tr),)

    # in + out, double-buffered, plus headroom; capped so v7x (64 MiB VMEM)
    # is always safe. Also lifts v5e's 16 MiB default scoped limit.
    block_vmem = 4 * tr * C * dsize
    vmem_limit = int(min(48 * 1024 * 1024,
                         max(32 * 1024 * 1024, block_vmem + (8 << 20))))

    kwargs = {}
    if donate:
        # Optional in-place write when the caller donates the buffer.
        kwargs["input_output_aliases"] = {0: 0}

    return pl.pallas_call(
        _relu_kernel,
        out_shape=jax.ShapeDtypeStruct((R, C), x2d.dtype),
        grid_spec=pltpu.PrefetchScalarGridSpec(
            num_scalar_prefetch=0,
            grid=grid,
            in_specs=[pl.BlockSpec((tr, C), lambda i: (i, 0))],
            out_specs=pl.BlockSpec((tr, C), lambda i: (i, 0)),
        ),
        compiler_params=pltpu.CompilerParams(
            dimension_semantics=("parallel",),
            vmem_limit_bytes=vmem_limit,
        ),
        **kwargs,
    )(x2d)


def local_activation(x, activation="relu", *, block_bytes=_DEFAULT_BLOCK_BYTES):
    """Pallas equivalent of LocalActivation.forward (NCHW or any shape)."""
    if activation == "None":
        return x
    if activation != "relu":
        raise ValueError(f"unsupported activation: {activation}")

    n = x.size
    sub = _sublanes(x.dtype)
    chunk = sub * _LANE

    flat = x.reshape(-1)
    n_main = (n // chunk) * chunk

    if n_main == 0:
        # Tensor smaller than one minimal tile: kernel launch not worth it.
        return jnp.maximum(x, 0).astype(x.dtype)

    main = flat[:n_main].reshape(-1, _LANE)
    y_main = _relu_2d(main, block_bytes=block_bytes)

    if n_main == n:
        # Common case: no padding, no concat, no trailing slice.
        return y_main.reshape(x.shape)

    # Tiny (< sub*128 element) tail handled in plain JAX instead of padding
    # the whole tensor (which would cost extra full HBM passes).
    tail = flat[n_main:]
    y_tail = jnp.maximum(tail, 0).astype(x.dtype)
    return jnp.concatenate([y_main.reshape(-1), y_tail]).reshape(x.shape)


if __name__ == "__main__":
    key = jax.random.PRNGKey(0)
    k0, k1, k2 = jax.random.split(key, 3)

    # Primary case implied by the module: small NCHW, f32, chunk-aligned.
    x = jax.random.normal(k0, (2, 4, 16, 16), dtype=jnp.float32)
    y = jax.block_until_ready(local_activation(x, activation="relu"))
    assert y.shape == x.shape and y.dtype == x.dtype
    assert jnp.array_equal(y, jnp.maximum(x, 0.0)), "mismatch (f32 aligned)"

    # 'None' passthrough branch.
    y_none = jax.block_until_ready(local_activation(x, activation="None"))
    assert jnp.array_equal(y_none, x)

    # Ragged total size (1155 elems, not a multiple of 8*128):
    # kernel on the divisible prefix + jnp tail.
    x2 = jax.random.normal(k1, (3, 5, 7, 11), dtype=jnp.float32)
    y2 = jax.block_until_ready(local_activation(x2, activation="relu"))
    assert y2.shape == x2.shape and y2.dtype == x2.dtype
    assert jnp.array_equal(y2, jnp.maximum(x2, 0.0)), "mismatch (ragged f32)"

    # bf16 with a tiny block override to exercise multi-step grid + ragged
    # last block (R=80 rows, tr=32 -> grid=3 with a masked 16-row tail block).
    x3 = jax.random.normal(k2, (2, 4, 40, 32), dtype=jnp.bfloat16)
    y3 = jax.block_until_ready(
        local_activation(x3, activation="relu", block_bytes=32 * 128 * 2))
    assert y3.shape == x3.shape and y3.dtype == x3.dtype
    assert jnp.array_equal(y3, jnp.maximum(x3, jnp.bfloat16(0))), \
        "mismatch (bf16 multi-block)"

    print("KERNEL_OK")
</pallas_src>

<mosaic_0001>
module attributes {stable_mosaic.version = 11 : i64} {
  func.func @_relu_kernel(%arg0: i32, %arg1: memref<16x128xf32, #tpu.memory_space<vmem>>, %arg2: memref<16x128xf32, #tpu.memory_space<vmem>>) attributes {dimension_semantics = [#tpu.dimension_semantics<parallel>], iteration_bounds = array<i64: 1>, scalar_prefetch = 0 : i64, scratch_operands = 0 : i64, tpu.core_type = #tpu.core_type<tc>, window_params = [{transform_indices = @transform_0, window_bounds = array<i64: 16, 128>}, {transform_indices = @transform_1, window_bounds = array<i64: 16, 128>}]} {
    %c0 = arith.constant 0 : index
    %c0_0 = arith.constant 0 : index
    %0 = vector.load %arg1[%c0, %c0_0] : memref<16x128xf32, #tpu.memory_space<vmem>>, vector<16x128xf32>
    %cst = arith.constant 0.000000e+00 : f32
    %1 = vector.broadcast %cst : f32 to vector<16x128xf32>
    %2 = arith.maximumf %0, %1 : vector<16x128xf32>
    %c0_1 = arith.constant 0 : index
    %c0_2 = arith.constant 0 : index
    %3 = vector.load %arg2[%c0_1, %c0_2] : memref<16x128xf32, #tpu.memory_space<vmem>>, vector<16x128xf32>
    tpu.vector_store %arg2[%c0_1, %c0_2], %2 {strides = array<i32>} : memref<16x128xf32, #tpu.memory_space<vmem>>, vector<16x128xf32>,
    return
  }
  func.func @transform_0(%arg0: i32) -> (i32, i32) {
    %c0_i32 = arith.constant 0 : i32
    %c0_i32_0 = arith.constant 0 : i32
    return %arg0, %c0_i32 : i32, i32
  }
  func.func @transform_1(%arg0: i32) -> (i32, i32) {
    %c0_i32 = arith.constant 0 : i32
    %c0_i32_0 = arith.constant 0 : i32
    return %arg0, %c0_i32 : i32, i32
  }
}

</mosaic_0001>

<bundles_post_ra>
// kernel: tpu_custom_call.1
= control target key start
LH: loop header
LB: loop body
LE: loop exit
PB: predicated region body
PF: predicated region fallthrough
CT: control target
= control target key end

     0   :  { %6 = vsyncpa [#allocation3], 0  ;;  %s126_s0 = inlined_call_operand.hbm [shape: f32[16,128], index: 0, kind: input, shape index: {}]   ;;  %s127_s1 = inlined_call_operand.hbm [shape: f32[16,128], index: 1, kind: output, shape index: {}]  }
   0x1   :  { %7 = vsyncpa [#allocation4], 0  ;;  %s12_s8 = sshll.u32 %s126_s0, 4  ;;  %s106_s9 = smov [#allocation2]   ;;  %s13_s8 = int_to_ptr.hbm [resolvable:$true] %s12_s8 }
   0x2   :  { %s14_s10 = sshll.u32 %s106_s9, 4  ;;  %s107_s11 = smov 128   ;;  %s15_s10 = int_to_ptr.vmem [resolvable:$true] %s14_s10 }
   0x3   :  { %s108_s12 = smov 8  }
   0x4   :  { %20 = dma.hbm_to_vmem [thread:$0]  %s13_s8, 256, %s15_s10, [#allocation3], %s107_s11, %s107_s11, %s108_s12  }
   0x5   :  { %102 = dma.done.wait [#allocation3], 256  }
   0x6   :  { %103 = vsyncadd [#allocation3], 4294967040  ;;  %s109_s13 = smov [#allocation5]   ;;  %s37_s17 = sshll.u32 %s127_s1, 4  ;;  %v25_v0 = vld [vmem:[#allocation2] sm:$0xff]  ;;  %v26_v1 = vld [vmem:[#allocation2 + $0x8] sm:$0xff]  ;;  %s38_s17 = int_to_ptr.hbm [resolvable:$true] %s37_s17 }
   0x7   :  { %s35_s14 = sshll.u32 %s109_s13, 4  ;;  %v27_v2 = vmax.f32 %v25_v0, 0.0  ;;  %v28_v3 = vmax.f32 %v26_v1, 0.0  ;;  %s36_s14 = int_to_ptr.vmem [resolvable:$true] %s35_s14 }
   0x9   :  { %29 = vst [vmem:[#allocation5] sm:$0xff] %v27_v2 }
   0xa   :  { %30 = vst [vmem:[#allocation5 + $0x8] sm:$0xff] %v28_v3 }
   0xb   :  { %43 = dma.vmem_to_hbm [thread:$0]  %s36_s14, 256, %s38_s17, [#allocation4], %s107_s11, %s107_s11, %s108_s12  }
   0xc   :  { %104 = dma.done.wait [#allocation4], 256  }
   0xd   :  { %105 = vsyncadd [#allocation4], 4294967040 }
   0xe   :  { %48 = vsyncpa [#allocation3], 1 }
   0xf   :  { %49 = vsyncpa [#allocation4], 1 }

</bundles_post_ra>
